<compile_context>
chip_gen: v7x
topology: tpu7x:2x2x1
jax: 0.10.0
libtpu: 0.0.40
codegen_flags: <defaults>
</compile_context>

<pallas_src>
import jax
import jax.numpy as jnp
from jax.experimental import pallas as pl
from jax.experimental.pallas import tpu as pltpu


def _round_up(x, m):
    return ((x + m - 1) // m) * m


def _slot_classifier_kernel(x_ref, w1_ref, w2_ref, b_ref, o_ref):
    # h = x @ W1^T   (bf16 MXU operands, f32 accumulation)
    x = x_ref[...].astype(jnp.bfloat16)
    h = jnp.dot(x, w1_ref[...], preferred_element_type=jnp.float32)
    # y = h @ W2^T + b
    y = jnp.dot(h.astype(jnp.bfloat16), w2_ref[...],
                preferred_element_type=jnp.float32)
    o_ref[...] = y + b_ref[...]


def _slot_classifier_dropout_kernel(x_ref, mask_ref, w1_ref, w2_ref, b_ref, o_ref):
    x = x_ref[...].astype(jnp.bfloat16)
    h = jnp.dot(x, w1_ref[...], preferred_element_type=jnp.float32)
    h = h * mask_ref[...]  # mask holds 0 or 1/(1-p); single f32 VPU multiply
    y = jnp.dot(h.astype(jnp.bfloat16), w2_ref[...],
                preferred_element_type=jnp.float32)
    o_ref[...] = y + b_ref[...]


def slot_classifier_forward(x, w1, w2, b2, *, dropout_rate=0.0, training=False,
                            rng_key=None, block_rows=256):
    """SlotClassifier forward.

    x : [..., D] float32
    w1: [H, D]  (linear_slot.weight, bias=False)
    w2: [L, H]  (linear.weight)
    b2: [L]     (linear.bias)
    """
    orig_lead = x.shape[:-1]
    D = x.shape[-1]
    H, L = w1.shape[0], w2.shape[0]

    x2 = x.reshape(-1, D).astype(jnp.float32)
    N = x2.shape[0]

    # Lane-dense padding for hidden / label dims; modest row tile sized well
    # within the 32 MiB scoped-VMEM default on every generation (incl. v7x).
    H_pad = _round_up(H, 128)
    L_pad = _round_up(L, 128)
    TB = min(block_rows, _round_up(max(N, 1), 8))
    N_pad = _round_up(N, TB)

    x_p = jnp.pad(x2, ((0, N_pad - N), (0, 0)))
    w1_t = jnp.pad(jnp.transpose(w1).astype(jnp.float32),
                   ((0, 0), (0, H_pad - H))).astype(jnp.bfloat16)          # [D, H_pad]
    w2_t = jnp.pad(jnp.transpose(w2).astype(jnp.float32),
                   ((0, H_pad - H), (0, L_pad - L))).astype(jnp.bfloat16)  # [H_pad, L_pad]
    b_p = jnp.pad(b2.astype(jnp.float32), (0, L_pad - L)).reshape(1, L_pad)

    grid = (N_pad // TB,)
    x_spec = pl.BlockSpec((TB, D), lambda i: (i, 0))
    w1_spec = pl.BlockSpec((D, H_pad), lambda i: (0, 0))     # VMEM-resident
    w2_spec = pl.BlockSpec((H_pad, L_pad), lambda i: (0, 0))  # VMEM-resident
    b_spec = pl.BlockSpec((1, L_pad), lambda i: (0, 0))
    out_spec = pl.BlockSpec((TB, L_pad), lambda i: (i, 0))

    compiler_params = pltpu.CompilerParams(
        dimension_semantics=("parallel",),       # megacore split on v7x
        vmem_limit_bytes=32 * 1024 * 1024,
    )
    out_shape = jax.ShapeDtypeStruct((N_pad, L_pad), jnp.float32)

    use_dropout = training and dropout_rate > 0.0
    if use_dropout:
        if rng_key is None:
            raise ValueError("rng_key is required when training with dropout_rate > 0")
        keep = jax.random.bernoulli(rng_key, 1.0 - dropout_rate, (N_pad, H_pad))
        mask = keep.astype(jnp.float32) * (1.0 / (1.0 - dropout_rate))
        out = pl.pallas_call(
            _slot_classifier_dropout_kernel,
            out_shape=out_shape,
            grid_spec=pltpu.PrefetchScalarGridSpec(
                num_scalar_prefetch=0,
                grid=grid,
                in_specs=[x_spec,
                          pl.BlockSpec((TB, H_pad), lambda i: (i, 0)),
                          w1_spec, w2_spec, b_spec],
                out_specs=out_spec,
            ),
            compiler_params=compiler_params,
        )(x_p, mask, w1_t, w2_t, b_p)
    else:
        out = pl.pallas_call(
            _slot_classifier_kernel,
            out_shape=out_shape,
            grid_spec=pltpu.PrefetchScalarGridSpec(
                num_scalar_prefetch=0,
                grid=grid,
                in_specs=[x_spec, w1_spec, w2_spec, b_spec],
                out_specs=out_spec,
            ),
            compiler_params=compiler_params,
        )(x_p, w1_t, w2_t, b_p)

    out = out[:N, :L]
    return out.reshape(orig_lead + (L,))


if __name__ == "__main__":
    # Small shapes consistent with the module: per-token slot classification.
    B, S = 2, 8      # batch, sequence length
    D = 32           # input_dim
    H = 200          # attention_embedding_size (module default)
    L = 8            # num_slot_labels

    key = jax.random.PRNGKey(0)
    kx, kw1, kw2, kb = jax.random.split(key, 4)

    x = jax.random.normal(kx, (B, S, D), dtype=jnp.float32)

    # Deterministic parameter init (mimics nn.Linear's uniform init range).
    bound1 = 1.0 / jnp.sqrt(jnp.float32(D))
    w1 = jax.random.uniform(kw1, (H, D), minval=-bound1, maxval=bound1,
                            dtype=jnp.float32)
    bound2 = 1.0 / jnp.sqrt(jnp.float32(H))
    w2 = jax.random.uniform(kw2, (L, H), minval=-bound2, maxval=bound2,
                            dtype=jnp.float32)
    b2 = jax.random.uniform(kb, (L,), minval=-bound2, maxval=bound2,
                            dtype=jnp.float32)

    # dropout_rate=0.0 (module default) -> dropout is the identity.
    out = slot_classifier_forward(x, w1, w2, b2, dropout_rate=0.0, training=False)
    out = jax.block_until_ready(out)

    assert out.shape == (B, S, L) and out.dtype == jnp.float32
    assert bool(jnp.all(jnp.isfinite(out)))

    # Reference with the same bf16-operand / f32-accumulate contract.
    x2 = x.reshape(-1, D)
    h_ref = jnp.dot(x2.astype(jnp.bfloat16), w1.T.astype(jnp.bfloat16),
                    preferred_element_type=jnp.float32)
    y_ref = jnp.dot(h_ref.astype(jnp.bfloat16), w2.T.astype(jnp.bfloat16),
                    preferred_element_type=jnp.float32) + b2
    y_ref = y_ref.reshape(B, S, L)
    assert bool(jnp.allclose(out, y_ref, atol=2e-2, rtol=2e-2))

    print("KERNEL_OK")
</pallas_src>

<mosaic_0001>
module attributes {stable_mosaic.version = 11 : i64} {
  func.func @_slot_classifier_kernel(%arg0: i32, %arg1: memref<16x32xf32, #tpu.memory_space<vmem>>, %arg2: memref<32x256xbf16, #tpu.memory_space<vmem>>, %arg3: memref<256x128xbf16, #tpu.memory_space<vmem>>, %arg4: memref<1x128xf32, #tpu.memory_space<vmem>>, %arg5: memref<16x128xf32, #tpu.memory_space<vmem>>) attributes {dimension_semantics = [#tpu.dimension_semantics<parallel>], iteration_bounds = array<i64: 1>, scalar_prefetch = 0 : i64, scratch_operands = 0 : i64, tpu.core_type = #tpu.core_type<tc>, window_params = [{transform_indices = @transform_0, window_bounds = array<i64: 16, 32>}, {pipeline_mode = #tpu.pipeline_mode<synchronous>, transform_indices = @transform_1, window_bounds = array<i64: 32, 256>}, {pipeline_mode = #tpu.pipeline_mode<synchronous>, transform_indices = @transform_2, window_bounds = array<i64: 256, 128>}, {pipeline_mode = #tpu.pipeline_mode<synchronous>, transform_indices = @transform_3, window_bounds = array<i64: 1, 128>}, {transform_indices = @transform_4, window_bounds = array<i64: 16, 128>}]} {
    %c0 = arith.constant 0 : index
    %c0_0 = arith.constant 0 : index
    %0 = vector.load %arg1[%c0, %c0_0] : memref<16x32xf32, #tpu.memory_space<vmem>>, vector<16x32xf32>
    %1 = arith.truncf %0 : vector<16x32xf32> to vector<16x32xbf16>
    %c0_1 = arith.constant 0 : index
    %c0_2 = arith.constant 0 : index
    %2 = vector.load %arg2[%c0_1, %c0_2] : memref<32x256xbf16, #tpu.memory_space<vmem>>, vector<32x256xbf16>
    %cst = arith.constant dense<0.000000e+00> : vector<16x256xf32>
    %3 = tpu.matmul %1, %2, %cst {dimension_numbers = #tpu.dot_dimension_numbers<[1], [0], [0], [1], [0, 0, 1, 1], [], []>} : vector<16x32xbf16>, vector<32x256xbf16>, vector<16x256xf32> -> vector<16x256xf32>
    %4 = arith.truncf %3 : vector<16x256xf32> to vector<16x256xbf16>
    %c0_3 = arith.constant 0 : index
    %c0_4 = arith.constant 0 : index
    %5 = vector.load %arg3[%c0_3, %c0_4] : memref<256x128xbf16, #tpu.memory_space<vmem>>, vector<256x128xbf16>
    %cst_5 = arith.constant dense<0.000000e+00> : vector<16x128xf32>
    %6 = tpu.matmul %4, %5, %cst_5 {dimension_numbers = #tpu.dot_dimension_numbers<[1], [0], [0], [1], [0, 0, 1, 1], [], []>} : vector<16x256xbf16>, vector<256x128xbf16>, vector<16x128xf32> -> vector<16x128xf32>
    %c0_6 = arith.constant 0 : index
    %c0_7 = arith.constant 0 : index
    %7 = vector.load %arg4[%c0_6, %c0_7] : memref<1x128xf32, #tpu.memory_space<vmem>>, vector<1x128xf32>
    %8 = vector.broadcast %7 : vector<1x128xf32> to vector<16x128xf32>
    %9 = arith.addf %6, %8 : vector<16x128xf32>
    %c0_8 = arith.constant 0 : index
    %c0_9 = arith.constant 0 : index
    %10 = vector.load %arg5[%c0_8, %c0_9] : memref<16x128xf32, #tpu.memory_space<vmem>>, vector<16x128xf32>
    tpu.vector_store %arg5[%c0_8, %c0_9], %9 {strides = array<i32>} : memref<16x128xf32, #tpu.memory_space<vmem>>, vector<16x128xf32>,
    return
  }
  func.func @transform_0(%arg0: i32) -> (i32, i32) {
    %c0_i32 = arith.constant 0 : i32
    %c0_i32_0 = arith.constant 0 : i32
    return %arg0, %c0_i32 : i32, i32
  }
  func.func @transform_1(%arg0: i32) -> (i32, i32) {
    %c0_i32 = arith.constant 0 : i32
    %c0_i32_0 = arith.constant 0 : i32
    %c0_i32_1 = arith.constant 0 : i32
    return %c0_i32, %c0_i32_0 : i32, i32
  }
  func.func @transform_2(%arg0: i32) -> (i32, i32) {
    %c0_i32 = arith.constant 0 : i32
    %c0_i32_0 = arith.constant 0 : i32
    %c0_i32_1 = arith.constant 0 : i32
    return %c0_i32, %c0_i32_0 : i32, i32
  }
  func.func @transform_3(%arg0: i32) -> (i32, i32) {
    %c0_i32 = arith.constant 0 : i32
    %c0_i32_0 = arith.constant 0 : i32
    %c0_i32_1 = arith.constant 0 : i32
    return %c0_i32, %c0_i32_0 : i32, i32
  }
  func.func @transform_4(%arg0: i32) -> (i32, i32) {
    %c0_i32 = arith.constant 0 : i32
    %c0_i32_0 = arith.constant 0 : i32
    return %arg0, %c0_i32 : i32, i32
  }
}

</mosaic_0001>

<bundles_post_ra>
// kernel: tpu_custom_call.1
= control target key start
LH: loop header
LB: loop body
LE: loop exit
PB: predicated region body
PF: predicated region fallthrough
CT: control target
= control target key end

     0   :  { %9 = vsyncpa [#allocation3], 0  ;;  %s602_s0 = inlined_call_operand.hbm [shape: f32[16,32], index: 0, kind: input, shape index: {}]   ;;  %s603_s1 = inlined_call_operand.hbm [shape: bf16[32,256], index: 1, kind: input, shape index: {}]   ;;  %s604_s2 = inlined_call_operand.hbm [shape: bf16[256,128], index: 2, kind: input, shape index: {}]   ;;  %s605_s3 = inlined_call_operand.vmem [shape: f32[1,128], index: 3, kind: input, shape index: {}]   ;;  %s606_s4 = inlined_call_operand.hbm [shape: f32[16,128], index: 4, kind: output, shape index: {}]  }
   0x1   :  { %10 = vsyncpa [#allocation6], 0 }
   0x2   :  { %11 = vsyncpa [#allocation4], 0  ;;  %s501_s15 = smov [#allocation5]   ;;  %s502_s17 = smov [#allocation2]  }
   0x3   :  { %s29_s16 = sshll.u32 %s501_s15, 4  ;;  %s17_s18 = sshll.u32 %s502_s17, 4  ;;  %s30_s16 = int_to_ptr.vmem [resolvable:$true] %s29_s16  ;;  %s535_s18 = int_to_ptr.vmem [resolvable:$true] %s17_s18 }
   0x4   :  { %s407_s21 = scalar_lea.hbm %s603_s1, 512 }
   0x5   :  { %p408_p0 = scmp.ne.s32.totalorder %s603_s1, %s407_s21  ;;  %p411_p1 = scmp.lt.u32.totalorder %s407_s21, %s603_s1 }
   0x7   :  { %p413_p2 = pnand %p411_p1, %p408_p0 }
   0x9   :  { %416 = shalt.err (!%p413_p2)
}
   0xa   :  { %s417_s26 = scalar_lea.vmem %s30_s16, 512  ;;  %p422_p4 = scmp.lt.s32.totalorder %s30_s16, %s30_s16 }
   0xb   :  { %p418_p3 = scmp.ne.s32.totalorder %s30_s16, %s417_s26  ;;  %p423_p5 = scmp.lt.s32.totalorder %s417_s26, %s417_s26 }
   0xd   :  { %p424_p6 = por %p423_p5, %p422_p4 }
   0xf   :  { %p425_p7 = pnand %p424_p6, %p418_p3 }
  0x11   :  { %428 = shalt.err (!%p425_p7)
}
  0x12   :  { %s503_s27 = smov 128   ;;  %s504_s28 = smov 8  }
  0x13   :  { %35 = dma.hbm_to_vmem [thread:$0]  %s603_s1, 512, %s30_s16, [#allocation6], %s503_s27, %s503_s27, %s504_s28  }
  0x14   :  { %s429_s7 = scalar_lea.hbm %s602_s0, 256 }
  0x15   :  { %p430_p8 = scmp.ne.s32.totalorder %s602_s0, %s429_s7  ;;  %p433_p9 = scmp.lt.u32.totalorder %s429_s7, %s602_s0 }
  0x17   :  { %p435_p10 = pnand %p433_p9, %p430_p8 }
  0x19   :  { %438 = shalt.err (!%p435_p10)
}
  0x1a   :  { %s439_s12 = scalar_lea.vmem %s535_s18, 256  ;;  %p444_p12 = scmp.lt.s32.totalorder %s535_s18, %s535_s18 }
  0x1b   :  { %p440_p11 = scmp.ne.s32.totalorder %s535_s18, %s439_s12  ;;  %p445_p13 = scmp.lt.s32.totalorder %s439_s12, %s439_s12 }
  0x1d   :  { %p446_p0 = por %p445_p13, %p444_p12 }
  0x1f   :  { %p447_p1 = pnand %p446_p0, %p440_p11 }
  0x21   :  { %450 = shalt.err (!%p447_p1)
}
  0x22   :  { %23 = dma.hbm_to_vmem [thread:$0]  %s602_s0, 256, %s535_s18, [#allocation3], %s503_s27, %s503_s27, %s504_s28  }
  0x23   :  { %s505_s14 = smov [#allocation7]   ;;  %s451_s19 = scalar_lea.hbm %s604_s2, 2048 }
  0x24   :  { %s41_s15 = sshll.u32 %s505_s14, 4  ;;  %p452_p2 = scmp.ne.s32.totalorder %s604_s2, %s451_s19  ;;  %s42_s15 = int_to_ptr.vmem [resolvable:$true] %s41_s15 }
  0x25   :  { %p455_p3 = scmp.lt.u32.totalorder %s451_s19, %s604_s2 }
  0x27   :  { %p457_p4 = pnand %p455_p3, %p452_p2 }
  0x29   :  { %460 = shalt.err (!%p457_p4)
}
  0x2a   :  { %s461_s24 = scalar_lea.vmem %s42_s15, 2048  ;;  %p466_p6 = scmp.lt.s32.totalorder %s42_s15, %s42_s15 }
  0x2b   :  { %p462_p5 = scmp.ne.s32.totalorder %s42_s15, %s461_s24  ;;  %p467_p7 = scmp.lt.s32.totalorder %s461_s24, %s461_s24 }
  0x2d   :  { %p468_p8 = por %p467_p7, %p466_p6 }
  0x2f   :  { %p469_p9 = pnand %p468_p8, %p462_p5 }
  0x31   :  { %472 = shalt.err (!%p469_p9)
}
  0x32   :  { %s506_s0 = smov 64   ;;  %s507_s18 = smov 4  }
  0x33   :  { %47 = dma.hbm_to_vmem [thread:$0]  %s604_s2, 2048, %s42_s15, [#allocation6], %s506_s0, %s506_s0, %s507_s18  }
  0x34   :  { %495 = dma.done.wait [#allocation3], 256  }
  0x35   :  { %496 = vsyncadd [#allocation3], 4294967040 }
  0x36   :  { %497 = dma.done.wait [#allocation6], 2560  }
  0x37   :  { %498 = vsyncadd [#allocation6], 4294964736  ;;  %v508_v0 = vmov 0   ;;  %v385_v1 = vld [vmem:[#allocation5 + $0x4] ss:$8 sps:$4 sm:$0xff]   ;;  %v60_v5 = vld [vmem:[#allocation2] sm:$0xff] }
  0x38   :  { %123 = vmatprep.mubr.bf16.mxu0 %v508_v0  ;;  %v387_v2 = vld [vmem:[#allocation5] ss:$8 sps:$4 sm:$0xff]   ;;  %91 = vmatprep.subr.bf16.mxu0 %v385_v1  ;;  %v388_v3 = vld [vmem:[#allocation5 + $0x14] ss:$8 sps:$4 sm:$0xff]   ;;  %v390_v4 = vld [vmem:[#allocation5 + $0x10] ss:$8 sps:$4 sm:$0xff]  }
  0x39   :  { %92 = vmatpush1.bf16.msra.mxu0 %v387_v2  ;;  %v61_v6 = vld [vmem:[#allocation2 + $0x8] sm:$0xff]  ;;  %v391_v7 = vld [vmem:[#allocation7 + $0x40] sm:$0xff]   ;;  %v393_v10 = vld [vmem:[#allocation7 + $0x48] sm:$0xff]   ;;  %vm87_vm0 = vcmask 261120   ;;  %s509_s30 = smov [#allocation8]  }
  0x3a   :  { %93 = vmatprep.subr.bf16.mxu0 %v388_v3  ;;  %v392_v8 = vld [vmem:[#allocation7] sm:$0xff]   ;;  %v62_v9 = vpack.c.bf16 %v61_v6, %v60_v5  ;;  %354 = vmatprep.subr.bf16.mxu1 %v391_v7  ;;  %v394_v11 = vld [vmem:[#allocation7 + $0x8] sm:$0xff]   ;;  %v395_v12 = vld [vmem:[#allocation7 + $0x50] sm:$0xff]   ;;  %s319_s5 = sshll.u32 %s509_s30, 4  ;;  %s320_s5 = int_to_ptr.vmem [resolvable:$true] %s319_s5 }
  0x3b   :  { %355 = vmatpush3.bf16.msra.mxu1 %v392_v8  ;;  %v396_v13 = vld [vmem:[#allocation7 + $0x10] sm:$0xff]   ;;  %v397_v14 = vld [vmem:[#allocation7 + $0x58] sm:$0xff]   ;;  %v399_v16 = vld [vmem:[#allocation7 + $0x60] sm:$0xff]   ;;  %s473_s6 = scalar_lea.vmem %s320_s5, 256  ;;  %p478_p11 = scmp.lt.s32.totalorder %s320_s5, %s320_s5 }
  0x3c   :  { %356 = vmatprep.subr.bf16.mxu1 %v393_v10  ;;  %v398_v15 = vld [vmem:[#allocation7 + $0x18] sm:$0xff]   ;;  %v400_v17 = vld [vmem:[#allocation7 + $0x20] sm:$0xff]   ;;  %v401_v18 = vld [vmem:[#allocation7 + $0x68] sm:$0xff]   ;;  %p474_p10 = scmp.ne.s32.totalorder %s320_s5, %s473_s6  ;;  %p479_p12 = scmp.lt.s32.totalorder %s473_s6, %s473_s6 }
  0x3d   :  { %94 = vmatpush1.bf16.msra.mxu0 %v390_v4  ;;  %v402_v19 = vld [vmem:[#allocation7 + $0x28] sm:$0xff]   ;;  %v403_v20 = vld [vmem:[#allocation7 + $0x70] sm:$0xff]   ;;  %v405_v22 = vld [vmem:[#allocation7 + $0x78] sm:$0xff]  }
  0x3e   :  { %v404_v21 = vld [vmem:[#allocation7 + $0x30] sm:$0xff]   ;;  %v406_v23 = vld [vmem:[#allocation7 + $0x38] sm:$0xff]   ;;  %p480_p13 = por %p479_p12, %p478_p11 }
  0x3f   :  { %357 = vmatpush3.bf16.msra.mxu1 %v394_v11  ;;  %v337_v31 = vld [vmem:[%s605_s3] ss:$0 sm:$0xff] }
  0x40   :  { %336 = vmatmul.mubr.msk.bf16.vlgmr.msra.gmra.mrb[0].mxu0 %vm87_vm0, %v62_v9  ;;  %358 = vmatprep.subr.bf16.mxu1 %v395_v12  ;;  %p481_p0 = pnand %p480_p13, %p474_p10 }
  0x43   :  { %359 = vmatpush3.bf16.msra.mxu1 %v396_v13 }
  0x44   :  { %360 = vmatprep.subr.bf16.mxu1 %v397_v14 }
  0x47   :  { %361 = vmatpush3.bf16.msra.mxu1 %v398_v15 }
  0x48   :  { %362 = vmatprep.subr.bf16.mxu1 %v399_v16 }
  0x4b   :  { %363 = vmatpush3.bf16.msra.mxu1 %v400_v17 }
  0x4c   :  { %364 = vmatprep.subr.bf16.mxu1 %v401_v18 }
  0x4f   :  { %365 = vmatpush3.bf16.msra.mxu1 %v402_v19 }
  0x50   :  { %366 = vmatprep.subr.bf16.mxu1 %v403_v20 }
  0x53   :  { %367 = vmatpush3.bf16.msra.mxu1 %v404_v21 }
  0x54   :  { %368 = vmatprep.subr.bf16.mxu1 %v405_v22 }
  0x57   :  { %369 = vmatpush3.bf16.msra.mxu1 %v406_v23 }
 0x113   :  { %v125_v24 = vpop.f32.mrb[0].mxu0 }
 0x114   :  { %v127_v25 = vpop.f32.mrb[1].mxu0 }
 0x115   :  { %v129_v26 = vpop.f32.mrb[2].mxu0 }
 0x116   :  { %v134_v27 = vpack.c.bf16 %v129_v26, %v125_v24  ;;  %v131_v28 = vpop.f32.mrb[3].mxu0 }
 0x117   :  { %v135_v29 = vpack.c.bf16 %v131_v28, %v127_v25 }
 0x119   :  { %303 = vmatprep.mubr.bf16.mxu1 %v135_v29 }
 0x11a   :  { %304 = vmatmul.mubr.bf16.vlgmr.msra.gmra.mrb[0].mxu1 %v134_v27 }
 0x1ed   :  { %v370_v30 = vpop.f32.mrb[0].mxu1 }
 0x1ee   :  { %v371_v32 = vpop.f32.mrb[1].mxu1 }
 0x1ef   :  { %v372_v33 = vadd.f32 %v371_v32, %v370_v30  ;;  %v373_v34 = vpop.f32.mrb[2].mxu1 }
 0x1f0   :  { %v374_v35 = vpop.f32.mrb[3].mxu1 }
 0x1f1   :  { %v306_v36 = vadd.f32 %v372_v33, %v337_v31  ;;  %v375_v37 = vadd.f32 %v374_v35, %v373_v34 }
 0x1f3   :  { %312 = vst [vmem:[#allocation8] sm:$0xff] %v306_v36  ;;  %v309_v38 = vadd.f32 %v375_v37, %v337_v31 }
 0x1f5   :  { %313 = vst [vmem:[#allocation8 + $0x8] sm:$0xff] %v309_v38 }
 0x1f6   :  { %484 = shalt.err (!%p481_p0)
}
 0x1f7   :  { %s485_s8 = scalar_lea.hbm %s606_s4, 256 }
 0x1f8   :  { %p486_p1 = scmp.ne.s32.totalorder %s606_s4, %s485_s8  ;;  %p489_p2 = scmp.lt.u32.totalorder %s485_s8, %s606_s4 }
 0x1fa   :  { %p491_p3 = pnand %p489_p2, %p486_p1 }
 0x1fc   :  { %494 = shalt.err (!%p491_p3)
}
 0x1fd   :  { %325 = dma.vmem_to_hbm [thread:$0]  %s320_s5, 256, %s606_s4, [#allocation4], %s503_s27, %s503_s27, %s504_s28  }
 0x1fe   :  { %499 = dma.done.wait [#allocation4], 256  }
 0x1ff   :  { %500 = vsyncadd [#allocation4], 4294967040 }
 0x200   :  { %329 = vsyncpa [#allocation3], 1 }
 0x201   :  { %330 = vsyncpa [#allocation6], 1 }
 0x202   :  { %331 = vsyncpa [#allocation4], 1 }

</bundles_post_ra>
